<compile_context>
chip_gen: v6e
topology: v6e:2x2x1
jax: 0.10.0
libtpu: 0.0.40
codegen_flags: <defaults>
</compile_context>

<pallas_src>
import functools

import jax
import jax.numpy as jnp
from jax.experimental import pallas as pl
from jax.experimental.pallas import tpu as pltpu

MODE = "sgan"        # 'sgan' -> Sigmoid head, 'wgan' -> raw critic score
BATCH_SIZE = 2
IN_FEATURES = 64
HIDDEN = 256
LRELU_SLOPE = 0.1
HEAD_PAD = 128       # lane-dense padding for the single-logit head


# ----------------------------------------------------------------------------
# Fused Pallas kernel: Linear + LeakyReLU(0.1) + Linear (+ Sigmoid), all VMEM.
# ----------------------------------------------------------------------------
def critic_kernel(x_ref, w1_ref, b1_ref, w2_ref, o_ref, *, apply_sigmoid):
    """x_ref:  (B, 64)        input (already squeezed)
       w1_ref: (64, 256)      spectrally-normalized W1^T
       b1_ref: (1, 256)       bias of layer 1
       w2_ref: (256, 128)     spectrally-normalized W2^T, zero-padded to 128 lanes
       o_ref:  (B, 1)         critic output
    """
    # Layer 1: Linear(64, 256) + LeakyReLU(0.1). f32 MXU accumulation.
    h = jnp.dot(x_ref[...], w1_ref[...], preferred_element_type=jnp.float32)
    h = h + b1_ref[...]
    h = jnp.where(h >= 0, h, LRELU_SLOPE * h)

    # Layer 2: Linear(256, 1, bias=False) done as a lane-dense (256,128) matmul;
    # only column 0 carries the real weight, the rest are zeros.
    y = jnp.dot(h, w2_ref[...], preferred_element_type=jnp.float32)   # (B, 128)
    logit = y[:, 0:1]                                                 # (B, 1)

    if apply_sigmoid:  # MODE == 'sgan'
        logit = 1.0 / (1.0 + jnp.exp(-logit))

    o_ref[...] = logit


def critic_pallas(x2d, w1_t, b1, w2_pad, *, apply_sigmoid):
    B = x2d.shape[0]
    kernel = functools.partial(critic_kernel, apply_sigmoid=apply_sigmoid)
    return pl.pallas_call(
        kernel,
        out_shape=jax.ShapeDtypeStruct((B, 1), jnp.float32),
        in_specs=[
            pl.BlockSpec((B, IN_FEATURES), lambda: (0, 0)),
            pl.BlockSpec((IN_FEATURES, HIDDEN), lambda: (0, 0)),
            pl.BlockSpec((1, HIDDEN), lambda: (0, 0)),
            pl.BlockSpec((HIDDEN, HEAD_PAD), lambda: (0, 0)),
        ],
        out_specs=pl.BlockSpec((B, 1), lambda: (0, 0)),
        compiler_params=pltpu.CompilerParams(vmem_limit_bytes=16 * 1024 * 1024),
    )(x2d, w1_t, b1, w2_pad)


# ----------------------------------------------------------------------------
# Glue: spectral norm (parameter prep), init, forward, pure-JAX reference.
# ----------------------------------------------------------------------------
def _l2_normalize(v, eps=1e-12):
    return v / (jnp.linalg.norm(v) + eps)


def spectral_norm_apply(w, u, n_iter=1):
    """SpectralNorm forward: view w as (height, -1), power-iterate, divide by sigma."""
    wmat = w.reshape(w.shape[0], -1)
    v = _l2_normalize(wmat.T @ u)
    for _ in range(n_iter):
        v = _l2_normalize(wmat.T @ u)
        u = _l2_normalize(wmat @ v)
    sigma = u @ (wmat @ v)
    return w / sigma


def init_params(key):
    k1, k2, k3, k4, k5 = jax.random.split(key, 5)
    bound1 = 1.0 / jnp.sqrt(IN_FEATURES)
    bound2 = 1.0 / jnp.sqrt(HIDDEN)
    return {
        # PyTorch Linear weight layout: (out_features, in_features)
        "w1": jax.random.uniform(k1, (HIDDEN, IN_FEATURES), jnp.float32,
                                 -bound1, bound1),
        "b1": jax.random.uniform(k2, (HIDDEN,), jnp.float32, -bound1, bound1),
        "u1": _l2_normalize(jax.random.normal(k3, (HIDDEN,), jnp.float32)),
        "w2": jax.random.uniform(k4, (1, HIDDEN), jnp.float32, -bound2, bound2),
        "u2": _l2_normalize(jax.random.normal(k5, (1,), jnp.float32)),
    }


@functools.partial(jax.jit, static_argnames=("mode",))
def critic_forward(x, params, mode=MODE):
    # x.squeeze(-2).squeeze(-1): (B, 64, 1, 1) -> (B, 64)
    x2d = x.reshape(x.shape[0], x.shape[1]).astype(jnp.float32)
    w1 = spectral_norm_apply(params["w1"], params["u1"])          # (256, 64)
    w2 = spectral_norm_apply(params["w2"], params["u2"])          # (1, 256)
    w1_t = jnp.transpose(w1)                                      # (64, 256)
    b1 = params["b1"].reshape(1, HIDDEN)
    w2_pad = jnp.zeros((HIDDEN, HEAD_PAD), jnp.float32).at[:, 0].set(w2[0])
    return critic_pallas(x2d, w1_t, b1, w2_pad, apply_sigmoid=(mode == "sgan"))


def reference_forward(x, params, mode=MODE):
    x2d = x.reshape(x.shape[0], x.shape[1]).astype(jnp.float32)
    w1 = spectral_norm_apply(params["w1"], params["u1"])
    w2 = spectral_norm_apply(params["w2"], params["u2"])
    h = x2d @ w1.T + params["b1"]
    h = jnp.where(h >= 0, h, LRELU_SLOPE * h)
    y = h @ w2.T
    if mode == "sgan":
        y = jax.nn.sigmoid(y)
    return y


if __name__ == "__main__":
    key = jax.random.PRNGKey(0)
    kx, kp = jax.random.split(key)
    # Input implied by forward(): (B, 64, 1, 1), squeezed to (B, 64).
    x = jax.random.normal(kx, (BATCH_SIZE, IN_FEATURES, 1, 1), jnp.float32)
    params = init_params(kp)

    out = critic_forward(x, params)
    jax.block_until_ready(out)
    assert out.shape == (BATCH_SIZE, 1), out.shape

    ref = reference_forward(x, params)
    assert jnp.allclose(out, ref, rtol=2e-3, atol=2e-3), (out, ref)
    print("KERNEL_OK")
</pallas_src>

<mosaic_0001>
module attributes {stable_mosaic.version = 11 : i64} {
  func.func @critic_kernel(%arg0: memref<2x64xf32, #tpu.memory_space<vmem>>, %arg1: memref<64x256xf32, #tpu.memory_space<vmem>>, %arg2: memref<1x256xf32, #tpu.memory_space<vmem>>, %arg3: memref<256x128xf32, #tpu.memory_space<vmem>>, %arg4: memref<2x1xf32, #tpu.memory_space<vmem>>) attributes {dimension_semantics = [], scalar_prefetch = 0 : i64, scratch_operands = 0 : i64, tpu.core_type = #tpu.core_type<tc>} {
    %c0 = arith.constant 0 : index
    %c0_0 = arith.constant 0 : index
    %0 = vector.load %arg0[%c0, %c0_0] : memref<2x64xf32, #tpu.memory_space<vmem>>, vector<2x64xf32>
    %c0_1 = arith.constant 0 : index
    %c0_2 = arith.constant 0 : index
    %1 = vector.load %arg1[%c0_1, %c0_2] : memref<64x256xf32, #tpu.memory_space<vmem>>, vector<64x256xf32>
    %cst = arith.constant dense<0.000000e+00> : vector<2x256xf32>
    %2 = tpu.matmul %0, %1, %cst {dimension_numbers = #tpu.dot_dimension_numbers<[1], [0], [0], [1], [0, 0, 1, 1], [], []>} : vector<2x64xf32>, vector<64x256xf32>, vector<2x256xf32> -> vector<2x256xf32>
    %c0_3 = arith.constant 0 : index
    %c0_4 = arith.constant 0 : index
    %3 = vector.load %arg2[%c0_3, %c0_4] : memref<1x256xf32, #tpu.memory_space<vmem>>, vector<1x256xf32>
    %4 = vector.broadcast %3 : vector<1x256xf32> to vector<2x256xf32>
    %5 = arith.addf %2, %4 : vector<2x256xf32>
    %cst_5 = arith.constant 0.000000e+00 : f32
    %6 = vector.broadcast %cst_5 : f32 to vector<2x256xf32>
    %7 = arith.cmpf oge, %5, %6 : vector<2x256xf32>
    %cst_6 = arith.constant 1.000000e-01 : f32
    %8 = vector.broadcast %cst_6 : f32 to vector<2x256xf32>
    %9 = arith.mulf %8, %5 : vector<2x256xf32>
    %10 = arith.select %7, %5, %9 : vector<2x256xi1>, vector<2x256xf32>
    %c0_7 = arith.constant 0 : index
    %c0_8 = arith.constant 0 : index
    %11 = vector.load %arg3[%c0_7, %c0_8] : memref<256x128xf32, #tpu.memory_space<vmem>>, vector<256x128xf32>
    %cst_9 = arith.constant dense<0.000000e+00> : vector<2x128xf32>
    %12 = tpu.matmul %10, %11, %cst_9 {dimension_numbers = #tpu.dot_dimension_numbers<[1], [0], [0], [1], [0, 0, 1, 1], [], []>} : vector<2x256xf32>, vector<256x128xf32>, vector<2x128xf32> -> vector<2x128xf32>
    %13 = vector.extract_strided_slice %12 {offsets = [0, 0], sizes = [2, 1], strides = [1, 1]} : vector<2x128xf32> to vector<2x1xf32>
    %cst_10 = arith.constant 0.000000e+00 : f32
    %14 = vector.broadcast %cst_10 : f32 to vector<2x1xf32>
    %15 = arith.subf %14, %13 : vector<2x1xf32>
    %16 = math.exp %15 : vector<2x1xf32>
    %cst_11 = arith.constant 1.000000e+00 : f32
    %17 = vector.broadcast %cst_11 : f32 to vector<2x1xf32>
    %18 = arith.addf %17, %16 : vector<2x1xf32>
    %cst_12 = arith.constant 1.000000e+00 : f32
    %19 = vector.broadcast %cst_12 : f32 to vector<2x1xf32>
    %20 = arith.divf %19, %18 : vector<2x1xf32>
    %c0_13 = arith.constant 0 : index
    %c0_14 = arith.constant 0 : index
    %21 = vector.load %arg4[%c0_13, %c0_14] : memref<2x1xf32, #tpu.memory_space<vmem>>, vector<2x1xf32>
    tpu.vector_store %arg4[%c0_13, %c0_14], %20 {strides = array<i32>} : memref<2x1xf32, #tpu.memory_space<vmem>>, vector<2x1xf32>,
    return
  }
}

</mosaic_0001>

<bundles_post_ra>
// kernel: critic_forward.1
= control target key start
LH: loop header
LB: loop body
LE: loop exit
PB: predicated region body
PF: predicated region fallthrough
CT: control target
= control target key end

     0   :  { %v282_v3 = vmov 0.0   ;;  %vm46_vm0 = vcmask 523264   ;;  %v36_v50 = vlaneseq  ;;  %vm235_vm3 = vcmask 1024   ;;  %s461_s1 = inlined_call_operand.vmem [shape: f32[64,256], index: 1, kind: input, shape index: {}]   ;;  %s462_s3 = inlined_call_operand.vmem [shape: f32[256,128], index: 3, kind: input, shape index: {}]   ;;  %s463_s0 = inlined_call_operand.vmem [shape: f32[2,64], index: 0, kind: input, shape index: {}]   ;;  %s464_s2 = inlined_call_operand.vmem [shape: f32[1,256], index: 2, kind: input, shape index: {}]   ;;  %s465_s4 = inlined_call_operand.vmem [shape: f32[2,1], index: 4, kind: output, shape index: {}]  }
   0x1   :  { %v33_v0 = vld [vmem:[%s461_s1 + $0x78] sm:$0xff]  ;;  %v32_v1 = vld [vmem:[%s461_s1 + $0x70] sm:$0xff]  ;;  %v31_v2 = vld [vmem:[%s461_s1 + $0x68] sm:$0xff]  ;;  %114 = vmatprep.mubr.f32.mxu0 %v282_v3 }
   0x2   :  { %66 = vmatprep.subr.mxu0 %v33_v0  ;;  %v30_v4 = vld [vmem:[%s461_s1 + $0x60] sm:$0xff]  ;;  %v29_v5 = vld [vmem:[%s461_s1 + $0x58] sm:$0xff]  ;;  %v28_v6 = vld [vmem:[%s461_s1 + $0x50] sm:$0xff]  ;;  %v37_v51 = vshrl.u32 %v36_v50, 7 }
   0x3   :  { %67 = vmatpush1.msra.mxu0 %v32_v1  ;;  %v27_v7 = vld [vmem:[%s461_s1 + $0x48] sm:$0xff]  ;;  %v26_v8 = vld [vmem:[%s461_s1 + $0x40] sm:$0xff]  ;;  %v25_v9 = vld [vmem:[%s461_s1 + $0x38] sm:$0xff] }
   0x4   :  { %68 = vmatprep.subr.mxu0 %v31_v2  ;;  %v158_v10 = vld [vmem:[%s462_s3 + $0xf8] sm:$0xff]  ;;  %v157_v12 = vld [vmem:[%s462_s3 + $0xf0] sm:$0xff]  ;;  %v156_v15 = vld [vmem:[%s462_s3 + $0xe8] sm:$0xff]  ;;  %v38_v52 = vsub.s32 0, %v37_v51  ;;  %v42_v54 = vsub.s32 1, %v37_v51 }
   0x5   :  { %69 = vmatpush1.msra.mxu0 %v30_v4  ;;  %242 = vmatprep.subr.mxu1 %v158_v10  ;;  %v142_v11 = vld [vmem:[%s462_s3 + $0x78] sm:$0xff]  ;;  %v141_v13 = vld [vmem:[%s462_s3 + $0x70] sm:$0xff]  ;;  %v23_v16 = vld [vmem:[%s461_s1 + $0x28] sm:$0xff] }
   0x6   :  { %70 = vmatprep.subr.mxu0 %v29_v5  ;;  %v24_v14 = vld [vmem:[%s461_s1 + $0x30] sm:$0xff]  ;;  %243 = vmatpush3.msra.mxu1 %v142_v11  ;;  %v140_v17 = vld [vmem:[%s462_s3 + $0x68] sm:$0xff]  ;;  %v22_v18 = vld [vmem:[%s461_s1 + $0x20] sm:$0xff] }
   0x7   :  { %71 = vmatpush1.msra.mxu0 %v28_v6  ;;  %244 = vmatprep.subr.mxu1 %v157_v12  ;;  %v155_v19 = vld [vmem:[%s462_s3 + $0xe0] sm:$0xff]  ;;  %v21_v20 = vld [vmem:[%s461_s1 + $0x18] sm:$0xff]  ;;  %v20_v22 = vld [vmem:[%s461_s1 + $0x10] sm:$0xff] }
   0x8   :  { %72 = vmatprep.subr.mxu0 %v27_v7  ;;  %245 = vmatpush3.msra.mxu1 %v141_v13  ;;  %v139_v21 = vld [vmem:[%s462_s3 + $0x60] sm:$0xff]  ;;  %v154_v23 = vld [vmem:[%s462_s3 + $0xd8] sm:$0xff]  ;;  %v19_v24 = vld [vmem:[%s461_s1 + $0x8] sm:$0xff] }
   0x9   :  { %73 = vmatpush1.msra.mxu0 %v26_v8  ;;  %246 = vmatprep.subr.mxu1 %v156_v15  ;;  %v138_v25 = vld [vmem:[%s462_s3 + $0x58] sm:$0xff]  ;;  %v18_v26 = vld [vmem:[%s461_s1] sm:$0xff]  ;;  %v153_v27 = vld [vmem:[%s462_s3 + $0xd0] sm:$0xff] }
   0xa   :  { %74 = vmatprep.subr.mxu0 %v25_v9  ;;  %247 = vmatpush3.msra.mxu1 %v140_v17  ;;  %v17_v28 = vld [vmem:[%s463_s0] sm:$0x3]  ;;  %v137_v29 = vld [vmem:[%s462_s3 + $0x50] sm:$0xff]  ;;  %v152_v30 = vld [vmem:[%s462_s3 + $0xc8] sm:$0xff] }
   0xb   :  { %75 = vmatpush1.msra.mxu0 %v24_v14  ;;  %248 = vmatprep.subr.mxu1 %v155_v19  ;;  %v136_v31 = vld [vmem:[%s462_s3 + $0x48] sm:$0xff]  ;;  %v151_v32 = vld [vmem:[%s462_s3 + $0xc0] sm:$0xff]  ;;  %v150_v34 = vld [vmem:[%s462_s3 + $0xb8] sm:$0xff] }
   0xc   :  { %76 = vmatprep.subr.mxu0 %v23_v16  ;;  %249 = vmatpush3.msra.mxu1 %v139_v21  ;;  %v135_v33 = vld [vmem:[%s462_s3 + $0x40] sm:$0xff]  ;;  %v134_v35 = vld [vmem:[%s462_s3 + $0x38] sm:$0xff]  ;;  %v149_v36 = vld [vmem:[%s462_s3 + $0xb0] sm:$0xff] }
   0xd   :  { %77 = vmatpush1.msra.mxu0 %v22_v18  ;;  %250 = vmatprep.subr.mxu1 %v154_v23  ;;  %v133_v37 = vld [vmem:[%s462_s3 + $0x30] sm:$0xff]  ;;  %v148_v38 = vld [vmem:[%s462_s3 + $0xa8] sm:$0xff]  ;;  %v147_v40 = vld [vmem:[%s462_s3 + $0xa0] sm:$0xff] }
   0xe   :  { %78 = vmatprep.subr.mxu0 %v21_v20  ;;  %251 = vmatpush3.msra.mxu1 %v138_v25  ;;  %v132_v39 = vld [vmem:[%s462_s3 + $0x28] sm:$0xff]  ;;  %v131_v41 = vld [vmem:[%s462_s3 + $0x20] sm:$0xff]  ;;  %v146_v42 = vld [vmem:[%s462_s3 + $0x98] sm:$0xff] }
   0xf   :  { %79 = vmatpush1.msra.mxu0 %v20_v22  ;;  %252 = vmatprep.subr.mxu1 %v153_v27  ;;  %v130_v43 = vld [vmem:[%s462_s3 + $0x18] sm:$0xff]  ;;  %v145_v44 = vld [vmem:[%s462_s3 + $0x90] sm:$0xff]  ;;  %v144_v46 = vld [vmem:[%s462_s3 + $0x88] sm:$0xff] }
  0x10   :  { %80 = vmatprep.subr.mxu0 %v19_v24  ;;  %253 = vmatpush3.msra.mxu1 %v137_v29  ;;  %v129_v45 = vld [vmem:[%s462_s3 + $0x10] sm:$0xff]  ;;  %v128_v47 = vld [vmem:[%s462_s3 + $0x8] sm:$0xff]  ;;  %v143_v48 = vld [vmem:[%s462_s3 + $0x80] sm:$0xff] }
  0x11   :  { %81 = vmatpush1.msra.mxu0 %v18_v26  ;;  %254 = vmatprep.subr.mxu1 %v152_v30  ;;  %v127_v49 = vld [vmem:[%s462_s3] sm:$0xff] }
  0x12   :  { %241 = vmatmul.mubr.msk.f32.vlgmr.msra.gmra.mxu0 %vm46_vm0, %v17_v28  ;;  %255 = vmatpush3.msra.mxu1 %v136_v31  ;;  %v34_v53 = vld [vmem:[%s464_s2] sm:$0x3] }
  0x13   :  { %256 = vmatprep.subr.mxu1 %v151_v32  ;;  %v39_v55 = vrot.slane %v34_v53, %v38_v52  ;;  %v43_v56 = vrot.slane %v34_v53, %v42_v54 }
  0x14   :  { %257 = vmatpush3.msra.mxu1 %v135_v33 }
  0x15   :  { %258 = vmatprep.subr.mxu1 %v150_v34 }
  0x16   :  { %259 = vmatpush3.msra.mxu1 %v134_v35 }
  0x17   :  { %260 = vmatprep.subr.mxu1 %v149_v36 }
  0x18   :  { %261 = vmatpush3.msra.mxu1 %v133_v37 }
  0x19   :  { %262 = vmatprep.subr.mxu1 %v148_v38 }
  0x1a   :  { %263 = vmatpush3.msra.mxu1 %v132_v39 }
  0x1b   :  { %264 = vmatprep.subr.mxu1 %v147_v40 }
  0x1c   :  { %265 = vmatpush3.msra.mxu1 %v131_v41 }
  0x1d   :  { %266 = vmatprep.subr.mxu1 %v146_v42 }
  0x1e   :  { %267 = vmatpush3.msra.mxu1 %v130_v43 }
  0x1f   :  { %268 = vmatprep.subr.mxu1 %v145_v44 }
  0x20   :  { %269 = vmatpush3.msra.mxu1 %v129_v45 }
  0x21   :  { %270 = vmatprep.subr.mxu1 %v144_v46 }
  0x22   :  { %271 = vmatpush3.msra.mxu1 %v128_v47 }
  0x23   :  { %272 = vmatprep.subr.mxu1 %v143_v48 }
  0x24   :  { %273 = vmatpush3.msra.mxu1 %v127_v49 }
  0xd2   :  { %v116_v57 = vpop.f32.mrf.mxu0 }
  0xd3   :  { %v117_v58 = vadd.f32 %v116_v57, %v39_v55 }
  0xd4   :  { %v118_v59 = vpop.f32.mrf.mxu0 }
  0xd5   :  { %v119_v60 = vadd.f32 %v118_v59, %v43_v56  ;;  %v123_v61 = vmul.f32 0.1, %v117_v58  ;;  %vm121_vm2 = vcmp.ge.f32.partialorder %v117_v58, 0.0 }
  0xd7   :  { %vm122_vm1 = vcmp.ge.f32.partialorder %v119_v60, 0.0  ;;  %v124_v62 = vmul.f32 0.1, %v119_v60  ;;  %v125_v0 = vsel %vm121_vm2, %v117_v58, %v123_v61 }
  0xd9   :  { %v126_v63 = vsel %vm122_vm1, %v119_v60, %v124_v62 }
  0xda   :  { %223 = vmatprep.mubr.f32.mxu1 %v126_v63 }
  0xdb   :  { %224 = vmatmul.mubr.f32.vlgmr.msra.gmra.mxu1 %v125_v0 }
 0x19b   :  { %v274_v1 = vpop.f32.mrf.mxu1 }
 0x19d   :  { %v275_v2 = vpop.f32.mrf.mxu1 }
 0x19e   :  { %v276_v3 = vadd.f32 %v275_v2, %v274_v1 }
 0x1a0   :  { %v229_v4 = vsub.f32 0.0, %v276_v3 }
 0x1a2   :  { %v230_v5 = vmul.f32 1.442695, %v229_v4 }
 0x1a4   :  { %278 = vpow2.f32 %v230_v5 }
 0x1b1   :  { %v279_v6 = vpop.eup %278 }
 0x1b2   :  { %v232_v7 = vadd.f32 1.0, %v279_v6 }
 0x1b4   :  { %280 = vrcp.f32 %v232_v7 }
 0x1c1   :  { %v281_v8 = vpop.eup %280 }
 0x1c2   :  { %236 = vst.msk [vmem:[%s465_s4] sm:$0x3] %vm235_vm3, %v281_v8 }

</bundles_post_ra>
